<compile_context>
chip_gen: v7x
topology: tpu7x:2x2x1
jax: 0.10.0
libtpu: 0.0.40
codegen_flags: <defaults>
</compile_context>

<pallas_src>
import jax
import jax.numpy as jnp
from jax import lax
from jax.experimental import pallas as pl
from jax.experimental.pallas import tpu as pltpu


# ---------------------------------------------------------------------------
# Single-k forward (matches MaskedWts.forward(x, k) exactly)
# ---------------------------------------------------------------------------
def masked_wts_kernel(k_ref, x_ref, w_ref, b_ref, o_ref):
    # k_ref: SMEM (1,) int32; x_ref: (B, indims); w_ref: (indims, outdims);
    # b_ref: (1, outdims); o_ref: (B, outdims)  -- all VMEM except k_ref.
    k = k_ref[0]
    B, indims = x_ref.shape

    # Zero column k of x (== zeroing row k of W) as a single fused select.
    col_ids = lax.broadcasted_iota(jnp.int32, (B, indims), 1)
    x_masked = jnp.where(col_ids == k, 0.0, x_ref[...])

    y = jnp.dot(x_masked, w_ref[...], preferred_element_type=jnp.float32)
    y = y + b_ref[...]                       # broadcast (1, outdims)
    o_ref[...] = jnp.maximum(y, 0.0).astype(o_ref.dtype)


def masked_wts_forward(x, weight, bias, k):
    """x: (B, indims) f32, weight: (indims, outdims) f32, bias: (outdims,) f32,
    k: python int (or 0-d int) -- index of the masked input feature.

    NOTE: if you need forward(x, k) for many k, use masked_wts_sweep -- one
    launch amortizes the x/W DMA and the fixed pallas_call overhead."""
    B, indims = x.shape
    indims_w, outdims = weight.shape
    assert indims == indims_w
    if isinstance(k, int):
        # PyTorch's mask[k, :] = 0 would raise on OOB; mirror that here.
        # TODO(synk): traced OOB k silently computes the unmasked forward.
        assert 0 <= k < indims, f"k={k} out of range for indims={indims}"
    k_arr = jnp.asarray([k], dtype=jnp.int32)
    bias2d = bias.reshape(1, outdims)

    return pl.pallas_call(
        masked_wts_kernel,
        out_shape=jax.ShapeDtypeStruct((B, outdims), x.dtype),
        in_specs=[
            pl.BlockSpec(memory_space=pltpu.MemorySpace.SMEM),   # k
            pl.BlockSpec(memory_space=pltpu.MemorySpace.VMEM),   # x
            pl.BlockSpec(memory_space=pltpu.MemorySpace.VMEM),   # weight
            pl.BlockSpec(memory_space=pltpu.MemorySpace.VMEM),   # bias
        ],
        out_specs=pl.BlockSpec(memory_space=pltpu.MemorySpace.VMEM),
    )(k_arr, x, weight, bias2d)


# ---------------------------------------------------------------------------
# Batched k-sweep: out[k] == masked_wts_forward(x, W, b, k) for every k.
# Single grid step: one MXU matmul + rank-1 corrections on the VPU.
# ---------------------------------------------------------------------------
def masked_wts_sweep_kernel(x_ref, xt_ref, w_ref, b_ref, o_ref):
    # x_ref:  (B, indims)        xt_ref: (indims, B)   (x transposed, wrapper)
    # w_ref:  (indims, outdims)  b_ref:  (1, outdims)
    # o_ref:  (indims, B, outdims)
    # base = unmasked forward pre-activation, computed ONCE on the MXU.
    base = jnp.dot(x_ref[...], w_ref[...], preferred_element_type=jnp.float32)
    base = base + b_ref[...]                                  # (B, outdims)

    # rank-1 correction for every k in one broadcasted VPU op:
    #   corr[k, b, n] = x[b, k] * W[k, n]
    corr = xt_ref[...][:, :, None] * w_ref[...][:, None, :]    # (indims, B, outdims)

    # out[k] = relu(base - corr[k]);  single resident store, flushed once.
    o_ref[...] = jnp.maximum(base[None, :, :] - corr, 0.0).astype(o_ref.dtype)


def masked_wts_sweep(x, weight, bias):
    """Run MaskedWts.forward for every k in [0, indims) in a single kernel
    invocation (no grid).  Returns (indims, B, outdims)."""
    B, indims = x.shape
    indims_w, outdims = weight.shape
    assert indims == indims_w
    bias2d = bias.reshape(1, outdims)
    x_t = x.T  # (indims, B); avoids an in-kernel transpose for the rank-1 term

    itemsize = jnp.dtype(x.dtype).itemsize
    cost = pl.CostEstimate(
        # one matmul + (mul, sub, max) per output element + bias add
        flops=2 * B * indims * outdims + 3 * indims * B * outdims + B * outdims,
        transcendentals=0,
        bytes_accessed=(2 * x.size + weight.size + bias.size
                        + indims * B * outdims) * itemsize,
    )

    return pl.pallas_call(
        masked_wts_sweep_kernel,
        out_shape=jax.ShapeDtypeStruct((indims, B, outdims), x.dtype),
        in_specs=[
            pl.BlockSpec(memory_space=pltpu.MemorySpace.VMEM),   # x
            pl.BlockSpec(memory_space=pltpu.MemorySpace.VMEM),   # x.T
            pl.BlockSpec(memory_space=pltpu.MemorySpace.VMEM),   # weight
            pl.BlockSpec(memory_space=pltpu.MemorySpace.VMEM),   # bias
        ],
        out_specs=pl.BlockSpec(memory_space=pltpu.MemorySpace.VMEM),
        cost_estimate=cost,
    )(x, x_t, weight, bias2d)


if __name__ == "__main__":
    # Small shapes consistent with the module: batch=8, indims=32, outdims=16
    B, indims, outdims = 8, 32, 16
    key = jax.random.PRNGKey(0)
    kx, kw = jax.random.split(key)

    x = jax.random.normal(kx, (B, indims), dtype=jnp.float32)
    # nn.init.normal_(weight, mean=0.0, std=0.01); bias = 0
    weight = 0.01 * jax.random.normal(kw, (indims, outdims), dtype=jnp.float32)
    bias = jnp.zeros((outdims,), dtype=jnp.float32)
    k = 3  # masked input index

    # --- single-k forward (module semantics) ---
    out = masked_wts_forward(x, weight, bias, k)
    out = jax.block_until_ready(out)

    mask = jnp.ones((indims, outdims), dtype=jnp.float32).at[k, :].set(0.0)
    ref = jnp.maximum(x @ (weight * mask) + bias, 0.0)
    assert jnp.allclose(out, ref, atol=1e-5, rtol=1e-5), "single-k mismatch"

    # --- batched k-sweep (all k, one launch, one grid step) ---
    out_all = masked_wts_sweep(x, weight, bias)
    out_all = jax.block_until_ready(out_all)

    ref_all = jnp.stack([
        jnp.maximum(
            x @ (weight * jnp.ones((indims, outdims), jnp.float32)
                 .at[kk, :].set(0.0)) + bias, 0.0)
        for kk in range(indims)
    ])
    assert jnp.allclose(out_all, ref_all, atol=1e-5, rtol=1e-5), "sweep mismatch"

    print("KERNEL_OK")
</pallas_src>

<mosaic_0001>
module attributes {stable_mosaic.version = 11 : i64} {
  func.func @masked_wts_kernel(%arg0: memref<1xi32, #tpu.memory_space<smem>>, %arg1: memref<8x32xf32, #tpu.memory_space<vmem>>, %arg2: memref<32x16xf32, #tpu.memory_space<vmem>>, %arg3: memref<1x16xf32, #tpu.memory_space<vmem>>, %arg4: memref<8x16xf32, #tpu.memory_space<vmem>>) attributes {dimension_semantics = [], scalar_prefetch = 0 : i64, scratch_operands = 0 : i64, tpu.core_type = #tpu.core_type<tc>} {
    %c0 = arith.constant 0 : index
    %0 = memref.load %arg0[%c0] : memref<1xi32, #tpu.memory_space<smem>>
    %1 = tpu.iota {dimensions = array<i32: 1>} : vector<8x32xi32>
    %2 = vector.broadcast %0 : i32 to vector<8x32xi32>
    %3 = arith.cmpi eq, %1, %2 : vector<8x32xi32>
    %c0_0 = arith.constant 0 : index
    %c0_1 = arith.constant 0 : index
    %4 = vector.load %arg1[%c0_0, %c0_1] : memref<8x32xf32, #tpu.memory_space<vmem>>, vector<8x32xf32>
    %cst = arith.constant 0.000000e+00 : f32
    %5 = vector.broadcast %cst : f32 to vector<8x32xf32>
    %6 = arith.select %3, %5, %4 : vector<8x32xi1>, vector<8x32xf32>
    %c0_2 = arith.constant 0 : index
    %c0_3 = arith.constant 0 : index
    %7 = vector.load %arg2[%c0_2, %c0_3] : memref<32x16xf32, #tpu.memory_space<vmem>>, vector<32x16xf32>
    %cst_4 = arith.constant dense<0.000000e+00> : vector<8x16xf32>
    %8 = tpu.matmul %6, %7, %cst_4 {dimension_numbers = #tpu.dot_dimension_numbers<[1], [0], [0], [1], [0, 0, 1, 1], [], []>} : vector<8x32xf32>, vector<32x16xf32>, vector<8x16xf32> -> vector<8x16xf32>
    %c0_5 = arith.constant 0 : index
    %c0_6 = arith.constant 0 : index
    %9 = vector.load %arg3[%c0_5, %c0_6] : memref<1x16xf32, #tpu.memory_space<vmem>>, vector<1x16xf32>
    %10 = vector.broadcast %9 : vector<1x16xf32> to vector<8x16xf32>
    %11 = arith.addf %8, %10 : vector<8x16xf32>
    %cst_7 = arith.constant 0.000000e+00 : f32
    %12 = vector.broadcast %cst_7 : f32 to vector<8x16xf32>
    %13 = arith.maximumf %11, %12 : vector<8x16xf32>
    %c0_8 = arith.constant 0 : index
    %c0_9 = arith.constant 0 : index
    %14 = vector.load %arg4[%c0_8, %c0_9] : memref<8x16xf32, #tpu.memory_space<vmem>>, vector<8x16xf32>
    tpu.vector_store %arg4[%c0_8, %c0_9], %13 {strides = array<i32>} : memref<8x16xf32, #tpu.memory_space<vmem>>, vector<8x16xf32>,
    return
  }
}

</mosaic_0001>

<bundles_post_ra>
// kernel: tpu_custom_call.1
= control target key start
LH: loop header
LB: loop body
LE: loop exit
PB: predicated region body
PF: predicated region fallthrough
CT: control target
= control target key end

     0   :  { %v20_v3 = vlaneseq  ;;  %v180_v4 = vmov 0.0|0.0   ;;  %vm181_vm0 = vmmov 0   ;;  %v182_v7 = vmov 0.0   ;;  %s242_s0 = inlined_call_operand.<no memory space> [shape: s32[1], index: 0, kind: input, shape index: {}]   ;;  %s243_s1 = inlined_call_operand.vmem [shape: f32[8,32], index: 1, kind: input, shape index: {}]   ;;  %s244_s2 = inlined_call_operand.vmem [shape: f32[32,16], index: 2, kind: input, shape index: {}]   ;;  %s245_s3 = inlined_call_operand.vmem [shape: f32[1,16], index: 3, kind: input, shape index: {}]   ;;  %s246_s4 = inlined_call_operand.hbm [shape: f32[8,16], index: 4, kind: output, shape index: {}]  }
   0x1   :  { %v26_v0 = vld [vmem:[%s244_s2] sm:$0xff]  ;;  %v27_v1 = vld [vmem:[%s244_s2 + $0x8] sm:$0xff]  ;;  %v28_v2 = vld [vmem:[%s244_s2 + $0x10] sm:$0xff]  ;;  %146 = vmatprep.subr.bf16.mxu0 %v180_v4  ;;  %143 = vmatprep.mubr.msk.f32.mxu0 %vm181_vm0, %v182_v7  ;;  %v22_v8 = vstv %s242_s0 }
   0x2   :  { %v147_v5 = vpack.c.bf16 %v27_v1, %v26_v0  ;;  %v29_v6 = vld [vmem:[%s244_s2 + $0x18] sm:$0xff]  ;;  %v21_v9 = vand.u32 127, %v20_v3 }
   0x3   :  { %10 = vsyncpa [#allocation4], 0  ;;  %v150_v10 = vpack.c.bf16 %v29_v6, %v28_v2  ;;  %v24_v11 = vld [vmem:[%s243_s1] sm:$0xff]  ;;  %vm37_vm2 = vcmask 261120   ;;  %s183_s0 = smov [#allocation3]   ;;  %vm112_vm3 = vcmask 130048  }
   0x4   :  { %148 = vmatpush3.bf16.msra.mxu0 %v147_v5  ;;  %vm23_vm1 = vcmp.eq.s32.totalorder %v21_v9, %v22_v8  ;;  %v128_v13 = vld [vmem:[%s245_s3] ss:$0 sm:$0xff]  ;;  %s120_s28 = sshll.u32 %s183_s0, 4  ;;  %s121_s28 = int_to_ptr.vmem [resolvable:$true] %s120_s28 }
   0x5   :  { %149 = vmatprep.subr.bf16.mxu0 %v180_v4  ;;  %v25_v12 = vsel %vm23_vm1, 0.0, %v24_v11  ;;  %s156_s29 = scalar_lea.vmem %s121_s28, 128  ;;  %p161_p1 = scmp.lt.s32.totalorder %s121_s28, %s121_s28 }
   0x6   :  { %p157_p0 = scmp.ne.s32.totalorder %s121_s28, %s156_s29  ;;  %p162_p2 = scmp.lt.s32.totalorder %s156_s29, %s156_s29 }
   0x8   :  { %151 = vmatpush3.bf16.msra.mxu0 %v150_v10  ;;  %p163_p3 = por %p162_p2, %p161_p1 }
   0xa   :  { %p164_p4 = pnand %p163_p3, %p157_p0 }
   0xb   :  { %144 = vmatmul.mubr.msk.f32.vlgmr.msra.gmra.mrb[0].mxu0 %vm37_vm2, %v25_v12 }
  0xde   :  { %v107_v14 = vpop.f32.mrb[0].mxu0 }
  0xdf   :  { %v108_v15 = vadd.f32 %v128_v13, %v107_v14  ;;  %v145_v16 = vpop.f32.mrb[1].mxu0 }
  0xe1   :  { %v111_v17 = vmax.f32 %v108_v15, 0.0 }
  0xe3   :  { %113 = vst.msk [vmem:[#allocation3] sm:$0xff] %vm112_vm3, %v111_v17 }
  0xe4   :  { %167 = shalt.err (!%p164_p4)
}
  0xe5   :  { %s168_s3 = scalar_lea.hbm %s246_s4, 128 }
  0xe6   :  { %p169_p5 = scmp.ne.s32.totalorder %s246_s4, %s168_s3  ;;  %p172_p6 = scmp.lt.u32.totalorder %s168_s3, %s246_s4 }
  0xe8   :  { %p174_p7 = pnand %p172_p6, %p169_p5 }
  0xea   :  { %177 = shalt.err (!%p174_p7)
}
  0xeb   :  { %123 = dma.vmem_to_hbm [thread:$0]  %s121_s28, 128, %s246_s4, [#allocation4]  }
  0xec   :  { %178 = dma.done.wait [#allocation4], 128  }
  0xed   :  { %179 = vsyncadd [#allocation4], 4294967168 }
  0xee   :  { %127 = vsyncpa [#allocation4], 1 }

</bundles_post_ra>
